<compile_context>
chip_gen: v7x
topology: tpu7x:2x2x1
jax: 0.10.0
libtpu: 0.0.40
codegen_flags: <defaults>
</compile_context>

<pallas_src>
import jax
import jax.numpy as jnp
from jax.experimental import pallas as pl
from jax.experimental.pallas import tpu as pltpu


def luong_attention_kernel(qp_ref, mask_ref, vals_ref, ctx_ref, alphas_ref):
    # Per-grid-step views (grid iterates over blocks of the batch dimension):
    #   qp_ref     : (BB, K)    f32     pre-projected query (query @ W)
    #   mask_ref   : (BB, S)    any     nonzero = valid, 0 = masked
    #   vals_ref   : (BB, S, K) native  encoder states (keys == values)
    #   ctx_ref    : (BB, K)
    #   alphas_ref : (BB, S)
    qp = qp_ref[...].astype(jnp.float32)         # (BB, K)
    valid = mask_ref[...] != 0                    # (BB, S) bool
    vals_f = vals_ref[...].astype(jnp.float32)    # (BB, S, K), in-register upcast

    # scores[b, s] = sum_k qp[b, k] * vals[b, s, k]
    # VPU broadcast-multiply + lane reduce: a query length of 1 would waste the
    # MXU and pay per-batch matmul cadence on v5e/v6e; this kernel is HBM-bound
    # so the VPU/XLU slots are free.
    scores = jnp.sum(qp[:, None, :] * vals_f, axis=-1)   # (BB, S) f32

    # masked_fill(mask == 0, -inf); large finite fill keeps fully-masked rows
    # (incl. any ragged-edge rows) NaN-free; identical to -inf for any row with
    # >=1 valid position.
    scores = jnp.where(valid, scores, jnp.float32(-1e30))

    # Numerically stable softmax over the source-length axis, all in f32.
    smax = jnp.max(scores, axis=-1, keepdims=True)        # (BB, 1)
    e = jnp.exp(scores - smax)                             # (BB, S)
    denom = jnp.sum(e, axis=-1, keepdims=True)             # (BB, 1)
    alphas = e / denom                                     # exact normalization

    # context[b, k] = sum_s alphas[b, s] * vals[b, s, k]  (sublane reduce)
    ctx = jnp.sum(alphas[:, :, None] * vals_f, axis=1)     # (BB, K) f32

    ctx_ref[...] = ctx.astype(ctx_ref.dtype)
    alphas_ref[...] = alphas.astype(alphas_ref.dtype)


def _vmem_capacity_bytes():
    # Generation-aware VMEM capacity (64 MiB/TC on v7x, 128 MiB on v5e/v6e).
    try:
        info = pltpu.get_tpu_info()
        cap = int(getattr(info, "vmem_capacity_bytes", 0))
        if cap > 0:
            return cap
    except Exception:
        pass
    return 64 * 1024 * 1024


def _per_row_vmem_bytes(S, K, val_bytes):
    # Double-buffered values block (native dtype) + the f32 (S, K)
    # broadcast-multiply intermediates + small per-row f32 vectors.
    return 2 * S * K * val_bytes + 2 * S * K * 4 + 8 * (S + K)


def _pick_block_b(B, S, K, val_bytes, vmem_cap):
    per_row = _per_row_vmem_bytes(S, K, val_bytes)
    budget = vmem_cap // 4                      # headroom for compiler scratch
    max_bb = min(max(1, budget // max(per_row, 1)), B)
    if B >= 16:
        # >=2 grid steps so the "parallel" batch axis shards across both
        # TensorCores on v7x (single-TC v5e/v6e: costs nothing).
        max_bb = min(max_bb, -(-B // 2))
    if max_bb >= B:
        return B                                # full array dim: always legal
    bb8 = (max_bb // 8) * 8                     # sublane-dense block for the
    if bb8 < 8:                                 # rank-2 (B,S)/(B,K) tensors
        bb8 = 8 if B >= 8 else B
    # Prefer a multiple of 8 that divides B so no ragged edge block is needed
    # (padding `values` in HBM is exactly what we're avoiding).
    for d in range(bb8, 7, -8):
        if B % d == 0:
            return d
    return bb8                                  # ragged last block: Pallas masks edge writes


def luong_attention(query, mask, values, w_key, *, block_b=None):
    """query (B,1,H), mask (B,1,S), values (B,S,K), w_key (H,K) -> (ctx, alphas)."""
    B, Q, H = query.shape
    Bv, S, K = values.shape
    assert Q == 1 and Bv == B
    assert mask.shape == (B, 1, S)
    assert w_key.shape == (H, K)
    out_dtype = query.dtype

    # Algebraic reassociation: q @ (vals @ W^T)^T == (q @ W) @ vals^T.
    # Only the tiny (B, K) q_proj enters the kernel; `values` streams in its
    # native dtype (no f32 upcast / extra XLA pass over the big tensor).
    q_proj = jnp.einsum("bh,hk->bk",
                        query.reshape(B, H).astype(jnp.float32),
                        w_key.astype(jnp.float32))
    mask2 = mask.reshape(B, S)
    if mask2.dtype == jnp.bool_:
        mask2 = mask2.astype(jnp.int32)         # mask is tiny; int blocks are simplest

    val_bytes = jnp.dtype(values.dtype).itemsize
    vmem_cap = _vmem_capacity_bytes()
    if block_b is None:
        block_b = _pick_block_b(B, S, K, val_bytes, vmem_cap)
    block_b = max(1, min(int(block_b), B))
    grid_b = pl.cdiv(B, block_b)

    block_bytes = block_b * _per_row_vmem_bytes(S, K, val_bytes)
    vmem_limit = int(min(max(block_bytes + (8 << 20), 32 << 20),
                         int(vmem_cap * 0.85)))

    grid_spec = pltpu.PrefetchScalarGridSpec(
        num_scalar_prefetch=0,
        grid=(grid_b,),
        in_specs=[
            pl.BlockSpec((block_b, K), lambda b: (b, 0)),        # q_proj
            pl.BlockSpec((block_b, S), lambda b: (b, 0)),        # mask
            pl.BlockSpec((block_b, S, K), lambda b: (b, 0, 0)),  # values
        ],
        out_specs=[
            pl.BlockSpec((block_b, K), lambda b: (b, 0)),        # context
            pl.BlockSpec((block_b, S), lambda b: (b, 0)),        # alphas
        ],
    )

    ctx, alphas = pl.pallas_call(
        luong_attention_kernel,
        out_shape=(
            jax.ShapeDtypeStruct((B, K), out_dtype),
            jax.ShapeDtypeStruct((B, S), out_dtype),
        ),
        grid_spec=grid_spec,
        compiler_params=pltpu.CompilerParams(
            dimension_semantics=("parallel",),   # batch blocks shard across TCs (v7x)
            vmem_limit_bytes=vmem_limit,
        ),
    )(q_proj, mask2, values)

    # Restore the module's (B, 1, ...) output shapes.
    return ctx.reshape(B, 1, K), alphas.reshape(B, 1, S)


def luong_attention_ref(query, mask, values, w_key):
    # Pure-JAX reference mirroring the PyTorch forward exactly.
    proj_keys = jnp.einsum("bsk,hk->bsh", values, w_key)
    scores = jnp.einsum("bqh,bsh->bqs", query, proj_keys)
    scores = jnp.where(mask == 0, -jnp.inf, scores)
    alphas = jax.nn.softmax(scores, axis=-1)
    context = jnp.einsum("bqs,bsk->bqk", alphas, values)
    return context, alphas


if __name__ == "__main__":
    B, S, H, K = 2, 8, 32, 32  # batch, src_length, decoder hidden, key/encoder size

    key = jax.random.PRNGKey(0)
    k_q, k_v, k_w = jax.random.split(key, 3)

    query = jax.random.normal(k_q, (B, 1, H), dtype=jnp.float32)
    values = jax.random.normal(k_v, (B, S, K), dtype=jnp.float32)
    # Deterministic Kaiming-uniform-ish init for nn.Linear(K, H, bias=False).weight (H, K).
    bound = 1.0 / (K ** 0.5)
    w_key = jax.random.uniform(k_w, (H, K), dtype=jnp.float32,
                               minval=-bound, maxval=bound)
    # Deterministic padding mask: batch 0 fully valid, batch 1 has 5 valid tokens.
    lengths = jnp.array([S, 5])
    mask = (jnp.arange(S)[None, None, :] < lengths[:, None, None]).astype(jnp.float32)

    ctx, alphas = luong_attention(query, mask, values, w_key)
    jax.block_until_ready((ctx, alphas))

    ctx_ref, alphas_ref = luong_attention_ref(query, mask, values, w_key)
    assert jnp.allclose(alphas, alphas_ref, atol=1e-5, rtol=1e-5)
    assert jnp.allclose(ctx, ctx_ref, atol=1e-5, rtol=1e-5)
    assert jnp.allclose(jnp.sum(alphas, axis=-1), 1.0, atol=1e-5)

    print("KERNEL_OK")
</pallas_src>

<mosaic_0001>
module attributes {stable_mosaic.version = 11 : i64} {
  func.func @luong_attention_kernel(%arg0: i32, %arg1: memref<2x32xf32, #tpu.memory_space<vmem>>, %arg2: memref<2x8xf32, #tpu.memory_space<vmem>>, %arg3: memref<2x8x32xf32, #tpu.memory_space<vmem>>, %arg4: memref<2x32xf32, #tpu.memory_space<vmem>>, %arg5: memref<2x8xf32, #tpu.memory_space<vmem>>) attributes {dimension_semantics = [#tpu.dimension_semantics<parallel>], iteration_bounds = array<i64: 1>, scalar_prefetch = 0 : i64, scratch_operands = 0 : i64, tpu.core_type = #tpu.core_type<tc>, window_params = [{transform_indices = @transform_0, window_bounds = array<i64: 2, 32>}, {transform_indices = @transform_1, window_bounds = array<i64: 2, 8>}, {transform_indices = @transform_2, window_bounds = array<i64: 2, 8, 32>}, {transform_indices = @transform_3, window_bounds = array<i64: 2, 32>}, {transform_indices = @transform_4, window_bounds = array<i64: 2, 8>}]} {
    %c0 = arith.constant 0 : index
    %c0_0 = arith.constant 0 : index
    %0 = vector.load %arg1[%c0, %c0_0] : memref<2x32xf32, #tpu.memory_space<vmem>>, vector<2x32xf32>
    %c0_1 = arith.constant 0 : index
    %c0_2 = arith.constant 0 : index
    %1 = vector.load %arg2[%c0_1, %c0_2] : memref<2x8xf32, #tpu.memory_space<vmem>>, vector<2x8xf32>
    %cst = arith.constant 0.000000e+00 : f32
    %2 = vector.broadcast %cst : f32 to vector<2x8xf32>
    %3 = arith.cmpf one, %1, %2 : vector<2x8xf32>
    %c0_3 = arith.constant 0 : index
    %c0_4 = arith.constant 0 : index
    %c0_5 = arith.constant 0 : index
    %4 = vector.load %arg3[%c0_3, %c0_4, %c0_5] : memref<2x8x32xf32, #tpu.memory_space<vmem>>, vector<2x8x32xf32>
    %5 = vector.shape_cast %0 : vector<2x32xf32> to vector<2x1x32xf32>
    %6 = vector.broadcast %5 : vector<2x1x32xf32> to vector<2x8x32xf32>
    %7 = arith.mulf %6, %4 : vector<2x8x32xf32>
    %cst_6 = arith.constant dense<0.000000e+00> : vector<2x8xf32>
    %8 = vector.multi_reduction <add>, %7, %cst_6 [2] : vector<2x8x32xf32> to vector<2x8xf32>
    %cst_7 = arith.constant -1.000000e+30 : f32
    %9 = vector.broadcast %cst_7 : f32 to vector<2x8xf32>
    %10 = arith.select %3, %8, %9 : vector<2x8xi1>, vector<2x8xf32>
    %cst_8 = arith.constant dense<0xFF800000> : vector<2xf32>
    %11 = vector.multi_reduction <maximumf>, %10, %cst_8 [1] : vector<2x8xf32> to vector<2xf32>
    %12 = vector.shape_cast %11 : vector<2xf32> to vector<2x1xf32>
    %13 = vector.broadcast %12 : vector<2x1xf32> to vector<2x8xf32>
    %14 = arith.subf %10, %13 : vector<2x8xf32>
    %15 = math.exp %14 : vector<2x8xf32>
    %cst_9 = arith.constant dense<0.000000e+00> : vector<2xf32>
    %16 = vector.multi_reduction <add>, %15, %cst_9 [1] : vector<2x8xf32> to vector<2xf32>
    %17 = vector.shape_cast %16 : vector<2xf32> to vector<2x1xf32>
    %18 = vector.broadcast %17 : vector<2x1xf32> to vector<2x8xf32>
    %19 = arith.divf %15, %18 : vector<2x8xf32>
    %20 = vector.shape_cast %19 : vector<2x8xf32> to vector<2x8x1xf32>
    %21 = vector.broadcast %20 : vector<2x8x1xf32> to vector<2x8x32xf32>
    %22 = arith.mulf %21, %4 : vector<2x8x32xf32>
    %cst_10 = arith.constant dense<0.000000e+00> : vector<2x32xf32>
    %23 = vector.multi_reduction <add>, %22, %cst_10 [1] : vector<2x8x32xf32> to vector<2x32xf32>
    %c0_11 = arith.constant 0 : index
    %c0_12 = arith.constant 0 : index
    %24 = vector.load %arg4[%c0_11, %c0_12] : memref<2x32xf32, #tpu.memory_space<vmem>>, vector<2x32xf32>
    tpu.vector_store %arg4[%c0_11, %c0_12], %23 {strides = array<i32>} : memref<2x32xf32, #tpu.memory_space<vmem>>, vector<2x32xf32>,
    %c0_13 = arith.constant 0 : index
    %c0_14 = arith.constant 0 : index
    %25 = vector.load %arg5[%c0_13, %c0_14] : memref<2x8xf32, #tpu.memory_space<vmem>>, vector<2x8xf32>
    tpu.vector_store %arg5[%c0_13, %c0_14], %19 {strides = array<i32>} : memref<2x8xf32, #tpu.memory_space<vmem>>, vector<2x8xf32>,
    return
  }
  func.func @transform_0(%arg0: i32) -> (i32, i32) {
    %c0_i32 = arith.constant 0 : i32
    %c0_i32_0 = arith.constant 0 : i32
    return %arg0, %c0_i32 : i32, i32
  }
  func.func @transform_1(%arg0: i32) -> (i32, i32) {
    %c0_i32 = arith.constant 0 : i32
    %c0_i32_0 = arith.constant 0 : i32
    return %arg0, %c0_i32 : i32, i32
  }
  func.func @transform_2(%arg0: i32) -> (i32, i32, i32) {
    %c0_i32 = arith.constant 0 : i32
    %c0_i32_0 = arith.constant 0 : i32
    %c0_i32_1 = arith.constant 0 : i32
    return %arg0, %c0_i32, %c0_i32_0 : i32, i32, i32
  }
  func.func @transform_3(%arg0: i32) -> (i32, i32) {
    %c0_i32 = arith.constant 0 : i32
    %c0_i32_0 = arith.constant 0 : i32
    return %arg0, %c0_i32 : i32, i32
  }
  func.func @transform_4(%arg0: i32) -> (i32, i32) {
    %c0_i32 = arith.constant 0 : i32
    %c0_i32_0 = arith.constant 0 : i32
    return %arg0, %c0_i32 : i32, i32
  }
}

</mosaic_0001>

<bundles_post_ra>
// kernel: tpu_custom_call.1
= control target key start
LH: loop header
LB: loop body
LE: loop exit
PB: predicated region body
PF: predicated region fallthrough
CT: control target
= control target key end

     0   :  { %10 = vsyncpa [#allocation3], 0  ;;  %s393_s0 = inlined_call_operand.hbm [shape: f32[2,32], index: 0, kind: input, shape index: {}]   ;;  %s394_s1 = inlined_call_operand.vmem [shape: f32[2,8], index: 1, kind: input, shape index: {}]   ;;  %s395_s2 = inlined_call_operand.hbm [shape: f32[2,8,32], index: 2, kind: input, shape index: {}]   ;;  %s396_s3 = inlined_call_operand.hbm [shape: f32[2,32], index: 3, kind: output, shape index: {0}]   ;;  %s397_s4 = inlined_call_operand.hbm [shape: f32[2,8], index: 4, kind: output, shape index: {1}]  }
   0x1   :  { %11 = vsyncpa [#allocation6], 0 }
   0x2   :  { %12 = vsyncpa [#allocation4], 0 }
   0x3   :  { %13 = vsyncpa [#allocation9], 0  ;;  %s294_s15 = smov [#allocation2]   ;;  %s295_s17 = smov [#allocation5]  }
   0x4   :  { %s20_s16 = sshll.u32 %s294_s15, 4  ;;  %s31_s18 = sshll.u32 %s295_s17, 4  ;;  %s21_s16 = int_to_ptr.vmem [resolvable:$true] %s20_s16  ;;  %s326_s18 = int_to_ptr.vmem [resolvable:$true] %s31_s18 }
   0x5   :  { %s198_s21 = scalar_lea.hbm %s393_s0, 32 }
   0x6   :  { %p199_p0 = scmp.ne.s32.totalorder %s393_s0, %s198_s21  ;;  %p202_p1 = scmp.lt.u32.totalorder %s198_s21, %s393_s0 }
   0x8   :  { %p204_p2 = pnand %p202_p1, %p199_p0 }
   0xa   :  { %207 = shalt.err (!%p204_p2)
}
   0xb   :  { %s208_s26 = scalar_lea.vmem %s21_s16, 32  ;;  %p213_p4 = scmp.lt.s32.totalorder %s21_s16, %s21_s16 }
   0xc   :  { %p209_p3 = scmp.ne.s32.totalorder %s21_s16, %s208_s26  ;;  %p214_p5 = scmp.lt.s32.totalorder %s208_s26, %s208_s26 }
   0xe   :  { %p215_p6 = por %p214_p5, %p213_p4 }
  0x10   :  { %p216_p7 = pnand %p215_p6, %p209_p3 }
  0x12   :  { %219 = shalt.err (!%p216_p7)
}
  0x13   :  { %23 = dma.hbm_to_vmem [thread:$0]  %s393_s0, 32, %s21_s16, [#allocation3]  }
  0x14   :  { %s220_s5 = scalar_lea.hbm %s395_s2, 256 }
  0x15   :  { %p221_p8 = scmp.ne.s32.totalorder %s395_s2, %s220_s5  ;;  %p224_p9 = scmp.lt.u32.totalorder %s220_s5, %s395_s2 }
  0x17   :  { %p226_p10 = pnand %p224_p9, %p221_p8 }
  0x19   :  { %229 = shalt.err (!%p226_p10)
}
  0x1a   :  { %s230_s10 = scalar_lea.vmem %s326_s18, 256  ;;  %p235_p12 = scmp.lt.s32.totalorder %s326_s18, %s326_s18 }
  0x1b   :  { %p231_p11 = scmp.ne.s32.totalorder %s326_s18, %s230_s10  ;;  %p236_p13 = scmp.lt.s32.totalorder %s230_s10, %s230_s10 }
  0x1d   :  { %p237_p0 = por %p236_p13, %p235_p12 }
  0x1f   :  { %p238_p1 = pnand %p237_p0, %p231_p11 }
  0x21   :  { %241 = shalt.err (!%p238_p1)
}
  0x22   :  { %s296_s0 = smov 128   ;;  %s297_s11 = smov 8  }
  0x23   :  { %37 = dma.hbm_to_vmem [thread:$0]  %s395_s2, 256, %s326_s18, [#allocation6], %s296_s0, %s296_s0, %s297_s11  }
  0x24   :  { %286 = dma.done.wait [#allocation3], 32  }
  0x25   :  { %287 = vsyncadd [#allocation3], 4294967264 }
  0x26   :  { %288 = dma.done.wait [#allocation6], 256  }
  0x27   :  { %289 = vsyncadd [#allocation6], 4294967040  ;;  %v61_v0 = vlaneseq  ;;  %v298_v1 = vmov 1966171168   ;;  %v47_v10 = vld [vmem:[#allocation5] sm:$0xff]  ;;  %vm84_vm0 = vcmask 261120  }
  0x28   :  { %v59_v2 = vunpack.c.l.s4 %v298_v1  ;;  %v186_v7 = vld.sshfl [vmem:[#allocation2] sm:$0x11 pattern:$0x75316420]  ;;  %v48_v13 = vld [vmem:[#allocation5 + $0x8] sm:$0xff]  ;;  %vm103_vm1 = vcmask 1041409  }
  0x29   :  { %v62_v3 = vshrl.u32 %v61_v0, 7  ;;  %v57_v9 = vcombine.high %v186_v7, %v186_v7  ;;  %v94_v19 = vand.u32 127, %v61_v0  ;;  %v45_v22 = vld [vmem:[%s394_s1] sm:$0x3]  ;;  %vm107_vm3 = vcmask 58368   ;;  %s299_s1 = smov [#allocation8]  }
  0x2a   :  { %v60_v4 = vunpack.c.0.s8 %v59_v2  ;;  %vm46_vm2 = vcmp.ne.f32.partialorder %v45_v22, 0.0  ;;  %s172_s15 = sshll.u32 %s299_s1, 4  ;;  %s173_s15 = int_to_ptr.vmem [resolvable:$true] %s172_s15 }
  0x2b   :  { %v74_v6 = vsub.s32 0, %v62_v3  ;;  %v97_v21 = vsub.s32 %v94_v19, %v62_v3  ;;  %v128_v35 = vsub.s32 1, %v62_v3  ;;  %s242_s16 = scalar_lea.vmem %s173_s15, 32  ;;  %p247_p3 = scmp.lt.s32.totalorder %s173_s15, %s173_s15 }
  0x2c   :  { %v63_v5 = vsub.s32 %v60_v4, %v62_v3  ;;  %p243_p2 = scmp.ne.s32.totalorder %s173_s15, %s242_s16  ;;  %p248_p4 = scmp.lt.s32.totalorder %s242_s16, %s242_s16 }
  0x2e   :  { %v64_v8 = vrot.slane %v186_v7, %v63_v5  ;;  %v71_v12 = vrot.slane %v57_v9, %v63_v5  ;;  %p249_p5 = por %p248_p4, %p247_p3 }
  0x30   :  { %v75_v11 = vrot.slane %v64_v8, %v74_v6  ;;  %v79_v15 = vrot.slane %v71_v12, %v74_v6  ;;  %p250_p6 = pnand %p249_p5, %p243_p2 }
  0x32   :  { %v82_v14 = vmul.f32 %v75_v11, %v47_v10  ;;  %v83_v17 = vmul.f32 %v79_v15, %v48_v13 }
  0x34   :  { %v85_v16 = vsel %vm84_vm0, %v82_v14, 0.0  ;;  %v88_v18 = vsel %vm84_vm0, %v83_v17, 0.0 }
  0x35   :  { %86 = vadd.xlane.f32.xlu0 %v85_v16 }
  0x39   :  { %89 = vadd.xlane.f32.xlu0 %v88_v18 }
  0xc2   :  { %v87_v20 = vpop.xlane.xlu0 %86 }
  0xc3   :  { %v98_v24 = vrot.slane %v87_v20, %v97_v21 }
  0xc6   :  { %v90_v23 = vpop.xlane.xlu0 %89 }
  0xc7   :  { %v102_v25 = vrot.slane %v90_v23, %v97_v21 }
  0xc9   :  { %v104_v26 = vsel %vm103_vm1, %v102_v25, %v98_v24 }
  0xca   :  { %v106_v27 = vsel %vm46_vm2, %v104_v26, -1e+30 }
  0xcb   :  { %v108_v28 = vsel %vm107_vm3, %v106_v27, -inf }
  0xcc   :  { %109 = vmax.xlane.f32.xlu1 %v108_v28 }
 0x159   :  { %v110_v29 = vpop.xlane.xlu1 %109 }
 0x15a   :  { %v111_v30 = vsub.f32 %v106_v27, %v110_v29 }
 0x15c   :  { %v112_v31 = vmul.f32 1.442695, %v111_v30 }
 0x15e   :  { %194 = vpow2.f32 %v112_v31 }
 0x168   :  { %v195_v32 = vpop.eup %194 }
 0x169   :  { %v114_v33 = vsel %vm107_vm3, %v195_v32, 0.0 }
 0x16a   :  { %115 = vadd.xlane.f32.xlu1 %v114_v33 }
 0x1f7   :  { %v116_v34 = vpop.xlane.xlu1 %115 }
 0x1f8   :  { %196 = vrcp.f32 %v116_v34 }
 0x202   :  { %v197_v36 = vpop.eup %196 }
 0x203   :  { %v118_v37 = vmul.f32 %v197_v36, %v195_v32 }
 0x205   :  { %v129_v38 = vrot.slane %v118_v37, %v128_v35  ;;  %155 = vst.msk [vmem:[#allocation8] sm:$0x3] %vm107_vm3, %v118_v37  ;;  %v122_v39 = vrot.slane %v118_v37, %v74_v6 }
 0x207   :  { %131 = vbcast.lane.b32.xlu1 %v129_v38, 256  ;;  %124 = vbcast.lane.b32.xlu0 %v122_v39, 256 }
 0x208   :  { %253 = shalt.err (!%p250_p6)
}
 0x209   :  { %s254_s19 = scalar_lea.hbm %s397_s4, 32 }
 0x20a   :  { %p255_p7 = scmp.ne.s32.totalorder %s397_s4, %s254_s19  ;;  %p258_p8 = scmp.lt.u32.totalorder %s254_s19, %s397_s4 }
 0x20c   :  { %p260_p9 = pnand %p258_p8, %p255_p7 }
 0x20e   :  { %263 = shalt.err (!%p260_p9)
}
 0x20f   :  { %175 = dma.vmem_to_hbm [thread:$0]  %s173_s15, 32, %s397_s4, [#allocation9]   ;;  %vm153_vm4 = vcmask 254976  }
 0x210   :  { %s300_s26 = smov [#allocation7]  }
 0x211   :  { %s162_s4 = sshll.u32 %s300_s26, 4  ;;  %s163_s4 = int_to_ptr.vmem [resolvable:$true] %s162_s4 }
 0x212   :  { %s264_s27 = scalar_lea.vmem %s163_s4, 32  ;;  %p269_p11 = scmp.lt.s32.totalorder %s163_s4, %s163_s4 }
 0x213   :  { %p265_p10 = scmp.ne.s32.totalorder %s163_s4, %s264_s27  ;;  %p270_p12 = scmp.lt.s32.totalorder %s264_s27, %s264_s27 }
 0x215   :  { %p271_p13 = por %p270_p12, %p269_p11 }
 0x217   :  { %p272_p0 = pnand %p271_p13, %p265_p10 }
 0x279   :  { %v132_v40 = vpop.permute.xlu1 %131  ;;  %v125_v41 = vpop.permute.xlu0 %124 }
 0x27a   :  { %v134_v42 = vmul.f32 %v132_v40, %v48_v13  ;;  %v133_v43 = vmul.f32 %v125_v41, %v47_v10 }
 0x27c   :  { %v142_v44 = vsel %vm84_vm0, %v134_v42, 0.0  ;;  %v135_v45 = vsel %vm84_vm0, %v133_v43, 0.0 }
 0x27d   :  { %v143_v46 = vrot.slane %v142_v44, 4  ;;  %v136_v47 = vrot.slane %v135_v45, 4 }
 0x27f   :  { %v144_v48 = vadd.f32 %v143_v46, %v142_v44  ;;  %v137_v49 = vadd.f32 %v136_v47, %v135_v45 }
 0x281   :  { %v145_v50 = vrot.slane %v144_v48, 2  ;;  %v138_v51 = vrot.slane %v137_v49, 2 }
 0x283   :  { %v146_v52 = vadd.f32 %v145_v50, %v144_v48  ;;  %v139_v53 = vadd.f32 %v138_v51, %v137_v49 }
 0x285   :  { %v147_v54 = vrot.slane %v146_v52, 1  ;;  %v140_v55 = vrot.slane %v139_v53, 1 }
 0x287   :  { %v148_v56 = vadd.f32 %v147_v54, %v146_v52  ;;  %v141_v57 = vadd.f32 %v140_v55, %v139_v53 }
 0x289   :  { %v151_v58 = vsel %vm103_vm1, %v148_v56, %v141_v57 }
 0x28a   :  { %154 = vst.msk [vmem:[#allocation7] sm:$0x3] %vm153_vm4, %v151_v58 }
 0x28b   :  { %275 = shalt.err (!%p272_p0)
}
 0x28c   :  { %s276_s30 = scalar_lea.hbm %s396_s3, 32 }
 0x28d   :  { %p277_p1 = scmp.ne.s32.totalorder %s396_s3, %s276_s30  ;;  %p280_p2 = scmp.lt.u32.totalorder %s276_s30, %s396_s3 }
 0x28f   :  { %p282_p3 = pnand %p280_p2, %p277_p1 }
 0x291   :  { %285 = shalt.err (!%p282_p3)
}
 0x292   :  { %165 = dma.vmem_to_hbm [thread:$0]  %s163_s4, 32, %s396_s3, [#allocation4]  }
 0x293   :  { %290 = dma.done.wait [#allocation4], 32  }
 0x294   :  { %291 = vsyncadd [#allocation4], 4294967264 }
 0x295   :  { %292 = dma.done.wait [#allocation9], 32  }
 0x296   :  { %293 = vsyncadd [#allocation9], 4294967264 }
 0x297   :  { %182 = vsyncpa [#allocation3], 1 }
 0x298   :  { %183 = vsyncpa [#allocation6], 1 }
 0x299   :  { %184 = vsyncpa [#allocation4], 1 }
 0x29a   :  { %185 = vsyncpa [#allocation9], 1 }

</bundles_post_ra>
